<compile_context>
chip_gen: v5e
topology: v5e:2x2
jax: 0.10.0
libtpu: 0.0.40
codegen_flags: <defaults>
</compile_context>

<pallas_src>
import jax
import jax.numpy as jnp
import numpy as np
from jax.experimental import pallas as pl
from jax.experimental.pallas import tpu as pltpu


def _nearest_indices(out_size: int, in_size: int) -> jnp.ndarray:
    # Legacy PyTorch F.upsample(..., mode='nearest'): src = floor(dst * in / out).
    idx = (jnp.arange(out_size, dtype=jnp.int32) * in_size) // out_size
    return jnp.minimum(idx, in_size - 1)


def _make_fusion_kernel(channel_sizes):
    """Kernel: for each input i, y_i = x_i @ S_i, stored at its channel slice."""
    n_in = len(channel_sizes)
    offsets = []
    off = 0
    for c in channel_sizes:
        offsets.append(off)
        off += c

    def kernel(*refs):
        o_ref = refs[-1]                 # (1, C_total, Hout*Wout)  lane-dense
        for i in range(n_in):
            x_ref = refs[2 * i]          # (1, C_i, Hin_i*Win_i)
            s_ref = refs[2 * i + 1]      # (Hin_i*Win_i, Hout*Wout) one-hot
            y = jnp.dot(
                x_ref[0], s_ref[...], preferred_element_type=jnp.float32
            )                            # (C_i, Hout*Wout), exact (one-hot)
            c0 = offsets[i]
            c1 = c0 + channel_sizes[i]
            o_ref[0, c0:c1, :] = y.astype(o_ref.dtype)

    return kernel


def feature_fusion_network(inputs):
    """Pallas equivalent of FeatureFusionNetwork.forward (NCHW layout)."""
    Hout, Wout = inputs[0].shape[-2:]
    HW_out = Hout * Wout
    srcs = inputs[1:]
    N = srcs[0].shape[0]
    dtype = srcs[0].dtype

    operands = []
    in_specs = []
    channel_sizes = []
    for x in srcs:
        _, C, Hin, Win = x.shape
        hi = _nearest_indices(Hout, Hin)                              # (Hout,)
        wi = _nearest_indices(Wout, Win)                              # (Wout,)
        flat_src = (hi[:, None] * Win + wi[None, :]).reshape(-1)      # (HW_out,)
        # Combined one-hot: S[hw_in, hw_out] = 1 iff nearest map hits hw_in.
        S = jax.nn.one_hot(flat_src, Hin * Win, dtype=dtype).T        # (HW_in, HW_out)
        operands += [x.reshape(N, C, Hin * Win), S]
        in_specs += [
            pl.BlockSpec((1, C, Hin * Win), lambda n: (n, 0, 0)),
            pl.BlockSpec((Hin * Win, HW_out), lambda n: (0, 0)),
        ]
        channel_sizes.append(C)

    C_total = sum(channel_sizes)
    kernel = _make_fusion_kernel(tuple(channel_sizes))

    out_flat = pl.pallas_call(
        kernel,
        out_shape=jax.ShapeDtypeStruct((N, C_total, HW_out), dtype),
        grid_spec=pltpu.PrefetchScalarGridSpec(
            num_scalar_prefetch=0,
            grid=(N,),
            in_specs=in_specs,
            out_specs=pl.BlockSpec((1, C_total, HW_out), lambda n: (n, 0, 0)),
        ),
        compiler_params=pltpu.CompilerParams(
            dimension_semantics=("parallel",),
        ),
    )(*operands)

    # Layout plumbing only: restore NCHW.
    return out_flat.reshape(N, C_total, Hout, Wout)


# ---------------------------- pure-JAX reference -----------------------------

def _reference_fusion(inputs):
    Hout, Wout = inputs[0].shape[-2:]
    outs = []
    for x in inputs[1:]:
        Hin, Win = x.shape[-2:]
        hi = _nearest_indices(Hout, Hin)
        wi = _nearest_indices(Wout, Win)
        outs.append(x[:, :, hi][:, :, :, wi])
    return jnp.concatenate(outs, axis=1)


if __name__ == "__main__":
    key = jax.random.PRNGKey(0)
    k0, k1, k2 = jax.random.split(key, 3)

    # inputs[0] only defines the target spatial size (16, 16); it is NOT fused.
    x0 = jax.random.normal(k0, (2, 4, 16, 16), dtype=jnp.float32)
    x1 = jax.random.normal(k1, (2, 4, 8, 8), dtype=jnp.float32)
    x2 = jax.random.normal(k2, (2, 6, 4, 4), dtype=jnp.float32)
    inputs = [x0, x1, x2]

    out = jax.block_until_ready(feature_fusion_network(inputs))
    ref = jax.block_until_ready(_reference_fusion(inputs))

    assert out.shape == (2, 10, 16, 16), out.shape
    np.testing.assert_allclose(np.asarray(out), np.asarray(ref), rtol=1e-6, atol=1e-6)

    print("KERNEL_OK")
</pallas_src>

<mosaic_0001>
module attributes {stable_mosaic.version = 11 : i64} {
  func.func @kernel(%arg0: i32, %arg1: memref<1x4x64xf32, #tpu.memory_space<vmem>>, %arg2: memref<64x256xf32, #tpu.memory_space<vmem>>, %arg3: memref<1x6x16xf32, #tpu.memory_space<vmem>>, %arg4: memref<16x256xf32, #tpu.memory_space<vmem>>, %arg5: memref<1x10x256xf32, #tpu.memory_space<vmem>>) attributes {dimension_semantics = [#tpu.dimension_semantics<parallel>], iteration_bounds = array<i64: 2>, scalar_prefetch = 0 : i64, scratch_operands = 0 : i64, tpu.core_type = #tpu.core_type<tc>, window_params = [{transform_indices = @transform_0, window_bounds = array<i64: 1, 4, 64>}, {pipeline_mode = #tpu.pipeline_mode<synchronous>, transform_indices = @transform_1, window_bounds = array<i64: 64, 256>}, {transform_indices = @transform_2, window_bounds = array<i64: 1, 6, 16>}, {pipeline_mode = #tpu.pipeline_mode<synchronous>, transform_indices = @transform_3, window_bounds = array<i64: 16, 256>}, {transform_indices = @transform_4, window_bounds = array<i64: 1, 10, 256>}]} {
    %c0 = arith.constant 0 : index
    %c0_0 = arith.constant 0 : index
    %c0_1 = arith.constant 0 : index
    %0 = vector.load %arg1[%c0, %c0_0, %c0_1] : memref<1x4x64xf32, #tpu.memory_space<vmem>>, vector<1x4x64xf32>
    %1 = vector.shape_cast %0 : vector<1x4x64xf32> to vector<4x64xf32>
    %c0_2 = arith.constant 0 : index
    %c0_3 = arith.constant 0 : index
    %2 = vector.load %arg2[%c0_2, %c0_3] : memref<64x256xf32, #tpu.memory_space<vmem>>, vector<64x256xf32>
    %cst = arith.constant dense<0.000000e+00> : vector<4x256xf32>
    %3 = tpu.matmul %1, %2, %cst {dimension_numbers = #tpu.dot_dimension_numbers<[1], [0], [0], [1], [0, 0, 1, 1], [], []>} : vector<4x64xf32>, vector<64x256xf32>, vector<4x256xf32> -> vector<4x256xf32>
    %c0_4 = arith.constant 0 : index
    %c0_5 = arith.constant 0 : index
    %c0_6 = arith.constant 0 : index
    %4 = vector.load %arg5[%c0_4, %c0_5, %c0_6] : memref<1x10x256xf32, #tpu.memory_space<vmem>>, vector<1x4x256xf32>
    %5 = vector.shape_cast %4 : vector<1x4x256xf32> to vector<4x256xf32>
    %6 = vector.shape_cast %3 : vector<4x256xf32> to vector<1x4x256xf32>
    tpu.vector_store %arg5[%c0_4, %c0_5, %c0_6], %6 {strides = array<i32>} : memref<1x10x256xf32, #tpu.memory_space<vmem>>, vector<1x4x256xf32>,
    %c0_7 = arith.constant 0 : index
    %c0_8 = arith.constant 0 : index
    %c0_9 = arith.constant 0 : index
    %7 = vector.load %arg3[%c0_7, %c0_8, %c0_9] : memref<1x6x16xf32, #tpu.memory_space<vmem>>, vector<1x6x16xf32>
    %8 = vector.shape_cast %7 : vector<1x6x16xf32> to vector<6x16xf32>
    %c0_10 = arith.constant 0 : index
    %c0_11 = arith.constant 0 : index
    %9 = vector.load %arg4[%c0_10, %c0_11] : memref<16x256xf32, #tpu.memory_space<vmem>>, vector<16x256xf32>
    %cst_12 = arith.constant dense<0.000000e+00> : vector<6x256xf32>
    %10 = tpu.matmul %8, %9, %cst_12 {dimension_numbers = #tpu.dot_dimension_numbers<[1], [0], [0], [1], [0, 0, 1, 1], [], []>} : vector<6x16xf32>, vector<16x256xf32>, vector<6x256xf32> -> vector<6x256xf32>
    %c0_13 = arith.constant 0 : index
    %c4 = arith.constant 4 : index
    %c0_14 = arith.constant 0 : index
    %11 = vector.load %arg5[%c0_13, %c4, %c0_14] : memref<1x10x256xf32, #tpu.memory_space<vmem>>, vector<1x6x256xf32>
    %12 = vector.shape_cast %11 : vector<1x6x256xf32> to vector<6x256xf32>
    %13 = vector.shape_cast %10 : vector<6x256xf32> to vector<1x6x256xf32>
    tpu.vector_store %arg5[%c0_13, %c4, %c0_14], %13 {strides = array<i32>} : memref<1x10x256xf32, #tpu.memory_space<vmem>>, vector<1x6x256xf32>,
    return
  }
  func.func @transform_0(%arg0: i32) -> (i32, i32, i32) {
    %c0_i32 = arith.constant 0 : i32
    %c0_i32_0 = arith.constant 0 : i32
    %c0_i32_1 = arith.constant 0 : i32
    return %arg0, %c0_i32, %c0_i32_0 : i32, i32, i32
  }
  func.func @transform_1(%arg0: i32) -> (i32, i32) {
    %c0_i32 = arith.constant 0 : i32
    %c0_i32_0 = arith.constant 0 : i32
    %c0_i32_1 = arith.constant 0 : i32
    return %c0_i32, %c0_i32_0 : i32, i32
  }
  func.func @transform_2(%arg0: i32) -> (i32, i32, i32) {
    %c0_i32 = arith.constant 0 : i32
    %c0_i32_0 = arith.constant 0 : i32
    %c0_i32_1 = arith.constant 0 : i32
    return %arg0, %c0_i32, %c0_i32_0 : i32, i32, i32
  }
  func.func @transform_3(%arg0: i32) -> (i32, i32) {
    %c0_i32 = arith.constant 0 : i32
    %c0_i32_0 = arith.constant 0 : i32
    %c0_i32_1 = arith.constant 0 : i32
    return %c0_i32, %c0_i32_0 : i32, i32
  }
  func.func @transform_4(%arg0: i32) -> (i32, i32, i32) {
    %c0_i32 = arith.constant 0 : i32
    %c0_i32_0 = arith.constant 0 : i32
    %c0_i32_1 = arith.constant 0 : i32
    return %arg0, %c0_i32, %c0_i32_0 : i32, i32, i32
  }
}

</mosaic_0001>

<bundles_post_ra>
// kernel: tpu_custom_call.1
= control target key start
LH: loop header
LB: loop body
LE: loop exit
PB: predicated region body
PF: predicated region fallthrough
CT: control target
= control target key end

     0   :  { %9 = vsyncpa [#allocation3], 0  ;;  %s657_s0 = inlined_call_operand.vmem [shape: f32[2,4,64], index: 0, kind: input, shape index: {}]   ;;  %s658_s1 = inlined_call_operand.hbm [shape: f32[64,256], index: 1, kind: input, shape index: {}]   ;;  %s659_s2 = inlined_call_operand.vmem [shape: f32[2,6,16], index: 2, kind: input, shape index: {}]   ;;  %s660_s3 = inlined_call_operand.hbm [shape: f32[16,256], index: 3, kind: input, shape index: {}]   ;;  %s661_s4 = inlined_call_operand.vmem [shape: f32[2,10,256], index: 4, kind: output, shape index: {}]  }
   0x1   :  { %10 = vsyncpa [#allocation5], 0  ;;  %s613_s15 = smov 0  }
   0x2 LB: > { %s152_s18 = sshll.u32 %s658_s1, 4  ;;  %s457_s19 = sadd.s32 4294967295, %s582_s15   ;;  %s582_s15 = sphi %s613_s15, %s16_s15   ;;  %s153_s18 = int_to_ptr.hbm [resolvable:$true] %s152_s18 }
   0x3   : > { %p459_p0 = scmp.ge.s32.totalorder %s582_s15, 1  ;;  %p141_p1 = scmp.lt.s32.totalorder %s582_s15, 3 }
   0x4   : > { %p492_p2 = scmp.eq.s32.totalorder %s457_s19, 0  ;;  %s584_s21 = smov [#allocation2]  }
   0x5   : > { %p624_p3 = pnand %p459_p0, %p141_p1  ;;  %s154_s22 = sshll.u32 %s584_s21, 4  ;;  %s155_s22 = int_to_ptr.vmem [resolvable:$true] %s154_s22 }
   0x6   : > { %s166_s25 = sshll.u32 %s660_s3, 4  ;;  %s585_s26 = smov [#allocation4]   ;;  %s167_s25 = int_to_ptr.hbm [resolvable:$true] %s166_s25 }
   0x7   : > { %p485_p4 = pneg %p624_p3  ;;  %s168_s27 = sshll.u32 %s585_s26, 4  ;;  %s169_s27 = int_to_ptr.vmem [resolvable:$true] %s168_s27 }
   0x8   : > { %s586_s28 = smov 256   ;;  %s587_s29 = smov 16  }
   0x9   : > { %p486_p5 = pnand %p492_p2, %p485_p4  ;;  %198 = sbr.rel (%p624_p3) target bundleno = 165 (0xa5), region = 36 }
   0xb   : > { %488 = dma.hbm_to_vmem [thread:$0]  (!%p486_p5), %s153_s18, 2048, %s155_s22, [#allocation3], %s586_s28, %s586_s28, %s587_s29  }
   0xc   : > { %491 = dma.hbm_to_vmem [thread:$0]  (!%p486_p5), %s167_s25, 512, %s169_s27, [#allocation5], %s586_s28, %s586_s28, %s587_s29  }
   0xe   : > { %573 = dma.done.wait (%p492_p2), [#allocation3], 2048  }
   0xf   : > { %575 = vsyncadd (%p492_p2), [#allocation3], 4294965248 }
  0x10   : > { %577 = dma.done.wait (%p492_p2), [#allocation5], 512  }
  0x11   : > { %579 = vsyncadd (%p492_p2), [#allocation5], 4294966784  ;;  %p233_p6 = scmp.lt.s32.totalorder %s457_s19, 1  ;;  %v261_v0 = vld [vmem:[#allocation2 + $0x70] sm:$0xff]  ;;  %v262_v1 = vld [vmem:[#allocation2 + $0x78] sm:$0xff]  ;;  %vm314_vm0 = vcmask 130048  }
  0x12   : > { %v259_v2 = vld [vmem:[#allocation2 + $0x60] sm:$0xff]  ;;  %275 = vmatpush.msra.mxu0 %v261_v0  ;;  %295 = vmatpush.msra.mxu1 %v262_v1  ;;  %v260_v3 = vld [vmem:[#allocation2 + $0x68] sm:$0xff]  ;;  %v257_v4 = vld [vmem:[#allocation2 + $0x50] sm:$0xff]  ;;  %vm263_vm1 = vcmask 523264  }
  0x13   : > { %s664_s19 = smov (!%p233_p6, %s457_s19), 1  ;;  %v258_v5 = vld [vmem:[#allocation2 + $0x58] sm:$0xff]  ;;  %v312_v6 = vld [vmem:[#allocation4 + $0x10] sm:$0xff]  ;;  %v310_v8 = vld [vmem:[#allocation4] sm:$0xff] }
  0x14   : > { %s467_s30 = sshll.u32 %s664_s19, 3  ;;  %v313_v7 = vld [vmem:[#allocation4 + $0x18] sm:$0xff]  ;;  %276 = vmatpush.msra.mxu0 %v259_v2  ;;  %296 = vmatpush.msra.mxu1 %v260_v3  ;;  %v311_v9 = vld [vmem:[#allocation4 + $0x8] sm:$0xff]  ;;  %v255_v10 = vld [vmem:[#allocation2 + $0x40] sm:$0xff]  ;;  %s466_s8 = sshll.u32 %s664_s19, 2 }
  0x15   : > { %s240_s7 = scalar_lea.vmem %s659_s2, %s467_s30  ;;  %332 = vmatpush.msra.mxu2 %v312_v6  ;;  %352 = vmatpush.msra.mxu3 %v313_v7  ;;  %v256_v11 = vld [vmem:[#allocation2 + $0x48] sm:$0xff]  ;;  %v253_v13 = vld [vmem:[#allocation2 + $0x30] sm:$0xff]  ;;  %v254_v14 = vld [vmem:[#allocation2 + $0x38] sm:$0xff]  ;;  %s236_s11 = scalar_lea.vmem %s657_s0, %s466_s8 }
  0x16   : > { %277 = vmatpush.msra.mxu0 %v257_v4  ;;  %297 = vmatpush.msra.mxu1 %v258_v5  ;;  %v309_v12 = vld [vmem:[%s240_s7] sm:$0x3f]  ;;  %v252_v16 = vld [vmem:[#allocation2 + $0x28] sm:$0xff]  ;;  %v249_v17 = vld [vmem:[#allocation2 + $0x10] sm:$0xff]  ;;  %s476_s12 = sshll.u32 %s664_s19, 5 }
  0x17   : > { %333 = vmatpush.msra.mxu2 %v310_v8  ;;  %353 = vmatpush.msra.mxu3 %v311_v9  ;;  %v251_v15 = vld [vmem:[#allocation2 + $0x20] sm:$0xff]  ;;  %v250_v18 = vld [vmem:[#allocation2 + $0x18] sm:$0xff]  ;;  %v248_v20 = vld [vmem:[#allocation2 + $0x8] sm:$0xff]  ;;  %s245_s16 = scalar_lea.vmem %s661_s4, %s476_s12 }
  0x18   : > { %278 = vmatpush.msra.mxu0 %v255_v10  ;;  %298 = vmatpush.msra.mxu1 %v256_v11  ;;  %v247_v19 = vld [vmem:[#allocation2] sm:$0xff] }
  0x19   : > { %472 = vmatmul.msk.f32.vlgmr.msra.gmra.mxu2 %vm314_vm0, %v309_v12  ;;  %473 = vmatmul.msk.f32.vlgmr.msra.gmra.mxu3 %vm314_vm0, %v309_v12  ;;  %v246_v21 = vld [vmem:[%s236_s11] sm:$0xf] }
  0x1a   : > { %279 = vmatpush.msra.mxu0 %v253_v13  ;;  %299 = vmatpush.msra.mxu1 %v254_v14 }
  0x1c   : > { %280 = vmatpush.msra.mxu0 %v251_v15  ;;  %300 = vmatpush.msra.mxu1 %v252_v16 }
  0x1e   : > { %281 = vmatpush.msra.mxu0 %v249_v17  ;;  %301 = vmatpush.msra.mxu1 %v250_v18 }
  0x20   : > { %282 = vmatpush.msra.mxu0 %v247_v19  ;;  %302 = vmatpush.msra.mxu1 %v248_v20 }
  0x21   : > { %470 = vmatmul.msk.f32.vlgmr.msra.gmra.mxu0 %vm263_vm1, %v246_v21  ;;  %471 = vmatmul.msk.f32.vlgmr.msra.gmra.mxu1 %vm263_vm1, %v246_v21 }
  0x9c   : > { %v335_v22 = vpop.f32.mrf.mxu2  ;;  %v355_v23 = vpop.f32.mrf.mxu3 }
  0x9d   : > { %v360_v24 = vrot.slane %v335_v22, 4  ;;  %v361_v25 = vrot.slane %v355_v23, 4 }
  0x9e   : > { %v284_v26 = vpop.f32.mrf.mxu0  ;;  %v304_v27 = vpop.f32.mrf.mxu1 }
  0x9f   : > { %364 = vst [vmem:[%s245_s16] sm:$0xf0] %v360_v24 }
  0xa0   : > { %366 = vst [vmem:[%s245_s16 + $0x10] sm:$0x3] %v360_v24 }
  0xa1   : > { %365 = vst [vmem:[%s245_s16 + $0x8] sm:$0xf0] %v361_v25 }
  0xa2   : > { %367 = vst [vmem:[%s245_s16 + $0x18] sm:$0x3] %v361_v25 }
  0xa3   : > { %307 = vst [vmem:[%s245_s16] sm:$0xf] %v284_v26 }
  0xa4   : > { %308 = vst [vmem:[%s245_s16 + $0x8] sm:$0xf] %v304_v27 }
  0xa5 PF: > { %s16_s15 = sadd.s32 1, %s582_s15  }
  0xa6   : > { %p13_p7 = scmp.ge.s32.totalorder %s16_s15, 4  }
  0xa8   :  { %15 = sbr.rel (!%p13_p7) target bundleno = 2 (0x2), region = 78 }
  0xad   :  { %389 = vsyncpa [#allocation3], 1 }
  0xae   :  { %391 = vsyncpa [#allocation3 + $0x1], 1 }
  0xaf   :  { %392 = vsyncpa [#allocation5], 1 }

</bundles_post_ra>
